<compile_context>
chip_gen: v7x
topology: tpu7x:2x2x1
jax: 0.10.0
libtpu: 0.0.40
codegen_flags: <defaults>
</compile_context>

<pallas_src>
import functools

import jax
import jax.numpy as jnp
from jax.experimental import pallas as pl
from jax.experimental.pallas import tpu as pltpu

# Conservative scoped-VMEM budget / explicit limit that is valid on
# v5e (16 MiB default scoped), v6e (32 MiB default) and v7x (64 MiB physical).
VMEM_LIMIT_BYTES = 32 * 1024 * 1024
VMEM_BUDGET_BYTES = 24 * 1024 * 1024  # headroom under the explicit limit


def fused_mlp_kernel(x_ref, w_ref, o_ref):
    # x_ref: (tb, F), w_ref: (1, F) fused-weight row, o_ref: (tb, 1).
    # Broadcast multiply on the VPU, cross-lane reduce on the XLU; the 1-wide
    # store is a vst.msk but the kernel is HBM-read-bound so it is negligible.
    o_ref[...] = jnp.sum(x_ref[...] * w_ref[...], axis=-1, keepdims=True)


def fuse_weights(weights):
    """One-time weight prep (NOT in the per-call hot path).

    `weights` use PyTorch nn.Linear layout (out_features, in_features), bias-free.
    With no nonlinearities, y = x @ W1.T @ ... @ W5.T = x @ W_fused.
    Returned as a (out_features, F) row (out_features == 1 here).
    """
    w = jnp.asarray(weights[0], jnp.float32).T            # (F, F)
    for wi in weights[1:]:
        w = w @ jnp.asarray(wi, jnp.float32).T            # ... -> (F, out_f)
    return w.T                                            # (out_f, F)


def _pick_batch_tile(B, F, out_f, tb_hint, vmem_budget):
    """Batch tile: multiple of 8, VMEM-budgeted, >=2 grid steps when B >= 16."""
    if B <= 8:
        return B  # full-dim block is always legal
    # Bytes per batch row resident in VMEM under double-buffering:
    #   x tile (2 buffers) + output tile (2 buffers); weight row is negligible.
    per_row = 2 * F * 4 + 2 * out_f * 4
    tb_cap = max(8, (vmem_budget // per_row) // 8 * 8)
    tb = min(tb_hint, B, tb_cap)
    if B >= 16:
        # Ensure at least 2 grid steps so the "parallel" batch axis can shard
        # across the two TensorCores on v7x.
        tb = min(tb, max(8, (B // 2) // 8 * 8))
    return max(8, tb // 8 * 8)


@functools.partial(jax.jit, static_argnames=("tb",))
def mlp_forward(x, fused_w, *, tb=4096):
    """x: (B, F) f32.  fused_w: (out_f, F) f32 from fuse_weights().

    Returns (B, out_f) f32, matching MLP.forward semantics.
    """
    B, F = x.shape
    out_f, Fw = fused_w.shape
    assert Fw == F

    tb_eff = _pick_batch_tile(B, F, out_f, tb, VMEM_BUDGET_BYTES)
    grid = (pl.cdiv(B, tb_eff),)

    return pl.pallas_call(
        fused_mlp_kernel,
        out_shape=jax.ShapeDtypeStruct((B, out_f), jnp.float32),
        grid=grid,
        in_specs=[
            # x: tiled over batch, auto double-buffered by the BlockSpec pipeline.
            # Partial last tile is safe: each output row only reads its own row.
            pl.BlockSpec((tb_eff, F), lambda i: (i, 0)),
            # fused weight row: tiny, VMEM-resident across all grid steps.
            pl.BlockSpec((out_f, F), lambda i: (0, 0)),
        ],
        # Output at its real width — no lane padding, no wrapper slice pass.
        out_specs=pl.BlockSpec((tb_eff, out_f), lambda i: (i, 0)),
        compiler_params=pltpu.CompilerParams(
            # Batch axis is embarrassingly parallel -> shards across the two
            # TensorCores per chip on v7x; harmless on v5e/v6e.
            dimension_semantics=("parallel",),
            # Explicit limit so the budget-derived tile also works on v5e's
            # 16 MiB default scoped VMEM.
            vmem_limit_bytes=VMEM_LIMIT_BYTES,
        ),
    )(x, fused_w)


def init_weights(key, num_features):
    """Deterministic init matching the nn.Linear shapes (out, in), bias=False."""
    ks = jax.random.split(key, 5)
    shapes = [(num_features, num_features)] * 4 + [(1, num_features)]
    weights = []
    for k, (fo, fi) in zip(ks, shapes):
        bound = 1.0 / jnp.sqrt(fi)
        weights.append(
            jax.random.uniform(k, (fo, fi), jnp.float32, minval=-bound, maxval=bound)
        )
    return weights


if __name__ == "__main__":
    num_features = 32
    batch = 8

    key = jax.random.PRNGKey(0)
    kx, kw = jax.random.split(key)
    x = jax.random.normal(kx, (batch, num_features), dtype=jnp.float32)
    weights = init_weights(kw, num_features)

    # One-time weight prep, amortized across all forward calls.
    # NOTE: valid only while all layers stay bias-free and purely linear.
    fused_w = jax.block_until_ready(fuse_weights(weights))

    y = jax.block_until_ready(mlp_forward(x, fused_w))

    # Reference check in plain JAX (same math as the PyTorch chained nn.Linear).
    y_ref = x
    for w in weights:
        y_ref = y_ref @ w.T

    assert y.shape == (batch, 1), y.shape
    assert jnp.allclose(y, y_ref, atol=1e-4, rtol=1e-4), float(
        jnp.max(jnp.abs(y - y_ref))
    )

    print("KERNEL_OK")
</pallas_src>

<mosaic_0001>
module attributes {stable_mosaic.version = 11 : i64} {
  func.func @fused_mlp_kernel(%arg0: i32, %arg1: memref<8x32xf32, #tpu.memory_space<vmem>>, %arg2: memref<1x32xf32, #tpu.memory_space<vmem>>, %arg3: memref<8x1xf32, #tpu.memory_space<vmem>>) attributes {dimension_semantics = [#tpu.dimension_semantics<parallel>], iteration_bounds = array<i64: 1>, scalar_prefetch = 0 : i64, scratch_operands = 0 : i64, tpu.core_type = #tpu.core_type<tc>, window_params = [{transform_indices = @transform_0, window_bounds = array<i64: 8, 32>}, {pipeline_mode = #tpu.pipeline_mode<synchronous>, transform_indices = @transform_1, window_bounds = array<i64: 1, 32>}, {transform_indices = @transform_2, window_bounds = array<i64: 8, 1>}]} {
    %c0 = arith.constant 0 : index
    %c0_0 = arith.constant 0 : index
    %0 = vector.load %arg1[%c0, %c0_0] : memref<8x32xf32, #tpu.memory_space<vmem>>, vector<8x32xf32>
    %c0_1 = arith.constant 0 : index
    %c0_2 = arith.constant 0 : index
    %1 = vector.load %arg2[%c0_1, %c0_2] : memref<1x32xf32, #tpu.memory_space<vmem>>, vector<1x32xf32>
    %2 = vector.broadcast %1 : vector<1x32xf32> to vector<8x32xf32>
    %3 = arith.mulf %0, %2 : vector<8x32xf32>
    %cst = arith.constant dense<0.000000e+00> : vector<8xf32>
    %4 = vector.multi_reduction <add>, %3, %cst [1] : vector<8x32xf32> to vector<8xf32>
    %5 = vector.shape_cast %4 : vector<8xf32> to vector<8x1xf32>
    %c0_3 = arith.constant 0 : index
    %c0_4 = arith.constant 0 : index
    %6 = vector.load %arg3[%c0_3, %c0_4] : memref<8x1xf32, #tpu.memory_space<vmem>>, vector<8x1xf32>
    tpu.vector_store %arg3[%c0_3, %c0_4], %5 {strides = array<i32>} : memref<8x1xf32, #tpu.memory_space<vmem>>, vector<8x1xf32>,
    return
  }
  func.func @transform_0(%arg0: i32) -> (i32, i32) {
    %c0_i32 = arith.constant 0 : i32
    %c0_i32_0 = arith.constant 0 : i32
    return %arg0, %c0_i32 : i32, i32
  }
  func.func @transform_1(%arg0: i32) -> (i32, i32) {
    %c0_i32 = arith.constant 0 : i32
    %c0_i32_0 = arith.constant 0 : i32
    %c0_i32_1 = arith.constant 0 : i32
    return %c0_i32, %c0_i32_0 : i32, i32
  }
  func.func @transform_2(%arg0: i32) -> (i32, i32) {
    %c0_i32 = arith.constant 0 : i32
    %c0_i32_0 = arith.constant 0 : i32
    return %arg0, %c0_i32 : i32, i32
  }
}

</mosaic_0001>

<bundles_post_ra>
// kernel: mlp_forward.1
= control target key start
LH: loop header
LB: loop body
LE: loop exit
PB: predicated region body
PF: predicated region fallthrough
CT: control target
= control target key end

     0   :  { %7 = vsyncpa [#allocation3], 0  ;;  %s69_s9 = smov [#allocation2]   ;;  %s103_s0 = inlined_call_operand.hbm [shape: f32[8,32], index: 0, kind: input, shape index: {}]   ;;  %s104_s1 = inlined_call_operand.vmem [shape: f32[1,32], index: 1, kind: input, shape index: {}]   ;;  %s105_s2 = inlined_call_operand.vmem [shape: f32[8,1], index: 2, kind: output, shape index: {}]  }
   0x1   :  { %s14_s10 = sshll.u32 %s69_s9, 4  ;;  %s45_s13 = scalar_lea.hbm %s103_s0, 128  ;;  %s15_s10 = int_to_ptr.vmem [resolvable:$true] %s14_s10 }
   0x2   :  { %p46_p0 = scmp.ne.s32.totalorder %s103_s0, %s45_s13  ;;  %p49_p1 = scmp.lt.u32.totalorder %s45_s13, %s103_s0 }
   0x4   :  { %p51_p2 = pnand %p49_p1, %p46_p0 }
   0x6   :  { %54 = shalt.err (!%p51_p2)
}
   0x7   :  { %s55_s18 = scalar_lea.vmem %s15_s10, 128  ;;  %p60_p4 = scmp.lt.s32.totalorder %s15_s10, %s15_s10 }
   0x8   :  { %p56_p3 = scmp.ne.s32.totalorder %s15_s10, %s55_s18  ;;  %p61_p5 = scmp.lt.s32.totalorder %s55_s18, %s55_s18 }
   0xa   :  { %p62_p6 = por %p61_p5, %p60_p4 }
   0xc   :  { %p63_p7 = pnand %p62_p6, %p56_p3 }
   0xe   :  { %66 = shalt.err (!%p63_p7)
}
   0xf   :  { %17 = dma.hbm_to_vmem [thread:$0]  %s103_s0, 128, %s15_s10, [#allocation3]  }
  0x10   :  { %67 = dma.done.wait [#allocation3], 128  }
  0x11   :  { %68 = vsyncadd [#allocation3], 4294967168  ;;  %v23_v0 = vld [vmem:[#allocation2] sm:$0xff]  ;;  %vm32_vm0 = vcmask 261120   ;;  %vm36_vm1 = vcmask 7168  }
  0x12   :  { %v43_v1 = vld [vmem:[%s104_s1] ss:$0 sm:$0xff] }
  0x13   :  { %v31_v2 = vmul.f32 %v43_v1, %v23_v0 }
  0x15   :  { %v33_v3 = vsel %vm32_vm0, %v31_v2, 0.0 }
  0x16   :  { %34 = vadd.xlane.f32.xlu0 %v33_v3 }
  0xa3   :  { %v35_v4 = vpop.xlane.xlu0 %34 }
  0xa4   :  { %37 = vst.msk [vmem:[%s105_s2] sm:$0xff] %vm36_vm1, %v35_v4 }
  0xa5   :  { %42 = vsyncpa [#allocation3], 1 }

</bundles_post_ra>
